<compile_context>
chip_gen: v5e
topology: v5e:2x2
jax: 0.10.0
libtpu: 0.0.40
codegen_flags: <defaults>
</compile_context>

<pallas_src>
import math

import jax
import jax.numpy as jnp
from jax.experimental import pallas as pl
from jax.experimental.pallas import tpu as pltpu


def _identity_kernel(x_ref, o_ref):
    # Pure pass-through of the current tile (the module's forward has no ops).
    o_ref[...] = x_ref[...]


_LANE_CANDIDATES = (1024, 512, 256, 128)  # prefer wide, unmasked vst-friendly lanes


def _choose_view(total):
    """Pick a lane-dense (rows, lanes) 2-D view of `total` elements."""
    for lanes in _LANE_CANDIDATES:
        if total % lanes == 0:
            return total // lanes, lanes
    # Fallback: single full-array block (full-extent dims are exempt from the
    # (8, 128) divisibility rule).  Fine for the tiny shapes this model sees.
    return 1, total


def _choose_block_rows(rows, lanes, itemsize, target_bytes=4 << 20):
    """Largest row block (multiple of 8, dividing rows) within ~target_bytes."""
    if rows <= 8:
        return rows
    max_rows = max(8, ((target_bytes // (lanes * itemsize)) // 8) * 8)
    best = None
    r = 8
    while r <= min(rows, max_rows):
        if rows % r == 0:
            best = r
        r += 8
    return best if best is not None else rows


def _the_model2_forward_impl(x):
    orig_shape = x.shape
    total = math.prod(orig_shape)
    rows, lanes = _choose_view(total)
    x2d = x.reshape(rows, lanes)  # bitcast reshape under jit, no HBM copy

    block_rows = _choose_block_rows(rows, lanes, x.dtype.itemsize)
    grid = (rows // block_rows,)

    out2d = pl.pallas_call(
        _identity_kernel,
        out_shape=jax.ShapeDtypeStruct((rows, lanes), x.dtype),
        grid_spec=pltpu.PrefetchScalarGridSpec(
            num_scalar_prefetch=0,
            grid=grid,
            in_specs=[pl.BlockSpec((block_rows, lanes), lambda i: (i, 0))],
            out_specs=pl.BlockSpec((block_rows, lanes), lambda i: (i, 0)),
        ),
        # Identity: run in place on the (donated) input buffer.
        input_output_aliases={0: 0},
        compiler_params=pltpu.CompilerParams(
            dimension_semantics=("parallel",),
        ),
    )(x2d)

    return out2d.reshape(orig_shape)


# Donate the input so input_output_aliases makes this a true in-place no-op.
the_model2_forward = jax.jit(_the_model2_forward_impl, donate_argnums=0)


if __name__ == "__main__":
    key = jax.random.PRNGKey(0)
    shape, dtype = (2, 4, 16, 16), jnp.float32

    x = jax.random.normal(key, shape, dtype=dtype)
    # The input buffer is donated to the kernel, so build an identical
    # reference array from the same deterministic key for the check.
    expected = jax.random.normal(key, shape, dtype=dtype)

    y = the_model2_forward(x)
    y = jax.block_until_ready(y)

    # Since the reference forward has no compute, the output must equal the
    # (regenerated) input exactly.
    assert y.shape == expected.shape
    assert bool(jnp.all(y == expected))
    print("KERNEL_OK")
</pallas_src>

<mosaic_0001>
module attributes {stable_mosaic.version = 11 : i64} {
  func.func @_identity_kernel(%arg0: i32, %arg1: memref<2x1024xf32, #tpu.memory_space<vmem>>, %arg2: memref<2x1024xf32, #tpu.memory_space<vmem>>) attributes {dimension_semantics = [#tpu.dimension_semantics<parallel>], iteration_bounds = array<i64: 1>, scalar_prefetch = 0 : i64, scratch_operands = 0 : i64, tpu.core_type = #tpu.core_type<tc>, window_params = [{transform_indices = @transform_0, window_bounds = array<i64: 2, 1024>}, {transform_indices = @transform_1, window_bounds = array<i64: 2, 1024>}]} {
    %c0 = arith.constant 0 : index
    %c0_0 = arith.constant 0 : index
    %0 = vector.load %arg1[%c0, %c0_0] : memref<2x1024xf32, #tpu.memory_space<vmem>>, vector<2x1024xf32>
    %c0_1 = arith.constant 0 : index
    %c0_2 = arith.constant 0 : index
    %1 = vector.load %arg2[%c0_1, %c0_2] : memref<2x1024xf32, #tpu.memory_space<vmem>>, vector<2x1024xf32>
    tpu.vector_store %arg2[%c0_1, %c0_2], %0 {strides = array<i32>} : memref<2x1024xf32, #tpu.memory_space<vmem>>, vector<2x1024xf32>,
    return
  }
  func.func @transform_0(%arg0: i32) -> (i32, i32) {
    %c0_i32 = arith.constant 0 : i32
    %c0_i32_0 = arith.constant 0 : i32
    return %arg0, %c0_i32 : i32, i32
  }
  func.func @transform_1(%arg0: i32) -> (i32, i32) {
    %c0_i32 = arith.constant 0 : i32
    %c0_i32_0 = arith.constant 0 : i32
    return %arg0, %c0_i32 : i32, i32
  }
}

</mosaic_0001>

<bundles_post_ra>
// kernel: _the_model2_forward_impl.1
= control target key start
LH: loop header
LB: loop body
LE: loop exit
PB: predicated region body
PF: predicated region fallthrough
CT: control target
= control target key end

     0   :  { %s38_s0 = inlined_call_operand.vmem [shape: f32[2,1024], index: 0, kind: input, shape index: {}, may-alias: {0,1}]   ;;  %s39_s1 = inlined_call_operand.vmem [shape: f32[2,1024], index: 1, kind: output, shape index: {}, may-alias: {0,1}]  }
   0x1   :  { %v8_v0 = vld [vmem:[%s38_s0] sm:$0xff]  ;;  %v9_v1 = vld [vmem:[%s38_s0 + $0x8] sm:$0xff] }
   0x2   :  { %10 = vst [vmem:[%s39_s1] sm:$0xff] %v8_v0 }
   0x3   :  { %11 = vst [vmem:[%s39_s1 + $0x8] sm:$0xff] %v9_v1 }

</bundles_post_ra>
